<compile_context>
chip_gen: v7x
topology: tpu7x:2x2x1
jax: 0.10.0
libtpu: 0.0.40
codegen_flags: <defaults>
</compile_context>

<pallas_src>
import functools

import jax
import jax.numpy as jnp
from jax.experimental import pallas as pl
from jax.experimental.pallas import tpu as pltpu

DROPOUT_P = 0.2


def _round_up(x, m):
    return ((x + m - 1) // m) * m


def _random_bits_u32(gid, seed_u32):
    """Counter-based 32-bit hash (lowbias32-style) of a per-element id + seed."""
    x = gid + seed_u32 * jnp.uint32(0x9E3779B9)
    x = x ^ (x >> 16)
    x = x * jnp.uint32(0x7FEB352D)
    x = x ^ (x >> 15)
    x = x * jnp.uint32(0x846CA68B)
    x = x ^ (x >> 16)
    return x


def ffn_kernel(seed_ref, x_ref, w1_ref, b1_ref, w2_ref, b2_ref, o_ref, *,
               dropout_p, apply_dropout, compute_dtype):
    # x_ref:  (BM, Dp)  compute_dtype      w1_ref: (Dp, Hp) compute_dtype
    # b1_ref: (1, Hp)   f32                w2_ref: (Hp, Dp) compute_dtype
    # b2_ref: (1, Dp)   f32                o_ref:  (BM, Dp) out dtype

    # Linear 1 + ReLU  (bf16 MXU matmul, f32 accumulation / epilogue)
    h = jnp.dot(x_ref[...], w1_ref[...], preferred_element_type=jnp.float32)
    h = jnp.maximum(h + b1_ref[...], 0.0)

    # Linear 2
    y = jnp.dot(h.astype(compute_dtype), w2_ref[...],
                preferred_element_type=jnp.float32)
    y = y + b2_ref[...]

    if apply_dropout and dropout_p > 0.0:
        bm, dp = y.shape
        row = jax.lax.broadcasted_iota(jnp.int32, (bm, dp), 0)
        col = jax.lax.broadcasted_iota(jnp.int32, (bm, dp), 1)
        # Globally unique element id -> independent stream per element/block.
        gid = ((pl.program_id(0) * bm + row) * dp + col).astype(jnp.uint32)
        bits = _random_bits_u32(gid, seed_ref[0].astype(jnp.uint32))
        # Integer-threshold keep mask: P(keep) = 1 - p, no float conversion.
        threshold = jnp.uint32(int(dropout_p * 4294967296.0))
        keep = bits >= threshold
        y = jnp.where(keep, y * (1.0 / (1.0 - dropout_p)), 0.0)

    o_ref[...] = y.astype(o_ref.dtype)


def feed_forward(x, w1, b1, w2, b2, *, seed=0, dropout_p=DROPOUT_P,
                 training=True, block_rows=256, compute_dtype=jnp.bfloat16):
    """x: (..., n_embd). w1: (n_embd, hidden), w2: (hidden, n_embd).
    Returns same shape/dtype as x."""
    orig_shape = x.shape
    out_dtype = x.dtype
    d = orig_shape[-1]
    h = w1.shape[1]
    x2 = x.reshape(-1, d)
    n = x2.shape[0]

    # Lane-dense padding (multiples of 128) and row padding to the tile size.
    d_pad = _round_up(d, 128)
    h_pad = _round_up(h, 128)
    bm = min(block_rows, _round_up(n, 8))
    n_pad = _round_up(n, bm)

    x_p = jnp.pad(x2, ((0, n_pad - n), (0, d_pad - d))).astype(compute_dtype)
    w1_p = jnp.pad(w1, ((0, d_pad - d), (0, h_pad - h))).astype(compute_dtype)
    w2_p = jnp.pad(w2, ((0, h_pad - h), (0, d_pad - d))).astype(compute_dtype)
    b1_p = jnp.pad(b1, (0, h_pad - h)).reshape(1, h_pad).astype(jnp.float32)
    b2_p = jnp.pad(b2, (0, d_pad - d)).reshape(1, d_pad).astype(jnp.float32)
    seed_arr = jnp.asarray([seed], dtype=jnp.int32)

    kernel = functools.partial(
        ffn_kernel, dropout_p=float(dropout_p),
        apply_dropout=bool(training), compute_dtype=compute_dtype)

    # TODO(synk): for very large n_embd, add a hidden-dim grid axis with a
    # scratch accumulator instead of keeping full weights resident in VMEM.
    itemsize = jnp.dtype(compute_dtype).itemsize
    cost = pl.CostEstimate(
        flops=4 * n_pad * d_pad * h_pad,
        transcendentals=0,
        bytes_accessed=(n_pad * d_pad * itemsize                     # x
                        + 2 * d_pad * h_pad * itemsize               # w1, w2
                        + (h_pad + d_pad) * 4                        # biases
                        + n_pad * d_pad * jnp.dtype(out_dtype).itemsize))

    out = pl.pallas_call(
        kernel,
        out_shape=jax.ShapeDtypeStruct((n_pad, d_pad), out_dtype),
        grid_spec=pltpu.PrefetchScalarGridSpec(
            num_scalar_prefetch=1,
            grid=(n_pad // bm,),
            in_specs=[
                pl.BlockSpec((bm, d_pad), lambda i, s: (i, 0)),      # x
                pl.BlockSpec((d_pad, h_pad), lambda i, s: (0, 0)),   # w1
                pl.BlockSpec((1, h_pad), lambda i, s: (0, 0)),       # b1
                pl.BlockSpec((h_pad, d_pad), lambda i, s: (0, 0)),   # w2
                pl.BlockSpec((1, d_pad), lambda i, s: (0, 0)),       # b2
            ],
            out_specs=pl.BlockSpec((bm, d_pad), lambda i, s: (i, 0)),
        ),
        compiler_params=pltpu.CompilerParams(
            dimension_semantics=("parallel",),
            vmem_limit_bytes=48 * 1024 * 1024),
        cost_estimate=cost,
    )(seed_arr, x_p, w1_p, b1_p, w2_p, b2_p)

    return out[:n, :d].reshape(orig_shape)


def init_params(key, n_embd):
    """Deterministic init matching nn.Linear's U(-1/sqrt(fan_in), 1/sqrt(fan_in))."""
    hidden = 4 * n_embd
    k1, k2, k3, k4 = jax.random.split(key, 4)
    bound1 = 1.0 / (n_embd ** 0.5)
    bound2 = 1.0 / (hidden ** 0.5)
    # stored as [in, out] so kernel does x @ W
    w1 = jax.random.uniform(k1, (n_embd, hidden), jnp.float32, -bound1, bound1)
    b1 = jax.random.uniform(k2, (hidden,), jnp.float32, -bound1, bound1)
    w2 = jax.random.uniform(k3, (hidden, n_embd), jnp.float32, -bound2, bound2)
    b2 = jax.random.uniform(k4, (n_embd,), jnp.float32, -bound2, bound2)
    return w1, b1, w2, b2


if __name__ == "__main__":
    # Small shapes consistent with the module: (batch, seq, n_embd)
    B, T, D = 2, 8, 128  # n_embd scaled down from 650 -> 128 for the test
    key = jax.random.PRNGKey(0)
    kx, kp = jax.random.split(key)
    x = jax.random.normal(kx, (B, T, D), dtype=jnp.float32)
    w1, b1, w2, b2 = init_params(kp, D)

    # Eval-mode run (no dropout) checked against a bf16-matched JAX reference.
    y_eval = feed_forward(x, w1, b1, w2, b2, training=False)
    jax.block_until_ready(y_eval)

    xb = x.reshape(-1, D).astype(jnp.bfloat16)
    h_ref = jnp.dot(xb, w1.astype(jnp.bfloat16),
                    preferred_element_type=jnp.float32) + b1
    h_ref = jnp.maximum(h_ref, 0.0)
    ref = jnp.dot(h_ref.astype(jnp.bfloat16), w2.astype(jnp.bfloat16),
                  preferred_element_type=jnp.float32) + b2
    ref = ref.reshape(B, T, D)
    assert y_eval.shape == x.shape and y_eval.dtype == x.dtype
    assert jnp.allclose(y_eval, ref, atol=5e-2, rtol=5e-2), "mismatch vs reference"

    # Training-mode run (dropout on): check shape/dtype and drop statistics.
    y_train = feed_forward(x, w1, b1, w2, b2, seed=1234, training=True)
    jax.block_until_ready(y_train)
    assert y_train.shape == x.shape and y_train.dtype == x.dtype
    drop_frac = float(jnp.mean((y_train == 0.0).astype(jnp.float32)))
    assert 0.05 <= drop_frac <= 0.35, f"dropout fraction off: {drop_frac}"

    print("KERNEL_OK")
</pallas_src>

<mosaic_0001>
module attributes {stable_mosaic.version = 11 : i64} {
  func.func @ffn_kernel(%arg0: i32, %arg1: memref<1xi32, #tpu.memory_space<smem>>, %arg2: memref<16x128xbf16, #tpu.memory_space<vmem>>, %arg3: memref<128x512xbf16, #tpu.memory_space<vmem>>, %arg4: memref<1x512xf32, #tpu.memory_space<vmem>>, %arg5: memref<512x128xbf16, #tpu.memory_space<vmem>>, %arg6: memref<1x128xf32, #tpu.memory_space<vmem>>, %arg7: memref<16x128xf32, #tpu.memory_space<vmem>>) attributes {dimension_semantics = [#tpu.dimension_semantics<parallel>], iteration_bounds = array<i64: 1>, scalar_prefetch = 1 : i64, scratch_operands = 0 : i64, tpu.core_type = #tpu.core_type<tc>, window_params = [{transform_indices = @transform_0, window_bounds = array<i64: 16, 128>}, {pipeline_mode = #tpu.pipeline_mode<synchronous>, transform_indices = @transform_1, window_bounds = array<i64: 128, 512>}, {pipeline_mode = #tpu.pipeline_mode<synchronous>, transform_indices = @transform_2, window_bounds = array<i64: 1, 512>}, {pipeline_mode = #tpu.pipeline_mode<synchronous>, transform_indices = @transform_3, window_bounds = array<i64: 512, 128>}, {pipeline_mode = #tpu.pipeline_mode<synchronous>, transform_indices = @transform_4, window_bounds = array<i64: 1, 128>}, {transform_indices = @transform_5, window_bounds = array<i64: 16, 128>}]} {
    %c0 = arith.constant 0 : index
    %c0_0 = arith.constant 0 : index
    %0 = vector.load %arg2[%c0, %c0_0] : memref<16x128xbf16, #tpu.memory_space<vmem>>, vector<16x128xbf16>
    %c0_1 = arith.constant 0 : index
    %c0_2 = arith.constant 0 : index
    %1 = vector.load %arg3[%c0_1, %c0_2] : memref<128x512xbf16, #tpu.memory_space<vmem>>, vector<128x512xbf16>
    %cst = arith.constant dense<0.000000e+00> : vector<16x512xf32>
    %2 = tpu.matmul %0, %1, %cst {dimension_numbers = #tpu.dot_dimension_numbers<[1], [0], [0], [1], [0, 0, 1, 1], [], []>} : vector<16x128xbf16>, vector<128x512xbf16>, vector<16x512xf32> -> vector<16x512xf32>
    %c0_3 = arith.constant 0 : index
    %c0_4 = arith.constant 0 : index
    %3 = vector.load %arg4[%c0_3, %c0_4] : memref<1x512xf32, #tpu.memory_space<vmem>>, vector<1x512xf32>
    %4 = vector.broadcast %3 : vector<1x512xf32> to vector<16x512xf32>
    %5 = arith.addf %2, %4 : vector<16x512xf32>
    %cst_5 = arith.constant 0.000000e+00 : f32
    %6 = vector.broadcast %cst_5 : f32 to vector<16x512xf32>
    %7 = arith.maximumf %5, %6 : vector<16x512xf32>
    %8 = arith.truncf %7 : vector<16x512xf32> to vector<16x512xbf16>
    %c0_6 = arith.constant 0 : index
    %c0_7 = arith.constant 0 : index
    %9 = vector.load %arg5[%c0_6, %c0_7] : memref<512x128xbf16, #tpu.memory_space<vmem>>, vector<512x128xbf16>
    %cst_8 = arith.constant dense<0.000000e+00> : vector<16x128xf32>
    %10 = tpu.matmul %8, %9, %cst_8 {dimension_numbers = #tpu.dot_dimension_numbers<[1], [0], [0], [1], [0, 0, 1, 1], [], []>} : vector<16x512xbf16>, vector<512x128xbf16>, vector<16x128xf32> -> vector<16x128xf32>
    %c0_9 = arith.constant 0 : index
    %c0_10 = arith.constant 0 : index
    %11 = vector.load %arg6[%c0_9, %c0_10] : memref<1x128xf32, #tpu.memory_space<vmem>>, vector<1x128xf32>
    %12 = vector.broadcast %11 : vector<1x128xf32> to vector<16x128xf32>
    %13 = arith.addf %10, %12 : vector<16x128xf32>
    %c0_11 = arith.constant 0 : index
    %c0_12 = arith.constant 0 : index
    %14 = vector.load %arg7[%c0_11, %c0_12] : memref<16x128xf32, #tpu.memory_space<vmem>>, vector<16x128xf32>
    tpu.vector_store %arg7[%c0_11, %c0_12], %13 {strides = array<i32>} : memref<16x128xf32, #tpu.memory_space<vmem>>, vector<16x128xf32>,
    return
  }
  func.func @transform_0(%arg0: i32, %arg1: memref<1xi32, #tpu.memory_space<smem>>) -> (i32, i32) {
    %c0_i32 = arith.constant 0 : i32
    %c0_i32_0 = arith.constant 0 : i32
    return %arg0, %c0_i32 : i32, i32
  }
  func.func @transform_1(%arg0: i32, %arg1: memref<1xi32, #tpu.memory_space<smem>>) -> (i32, i32) {
    %c0_i32 = arith.constant 0 : i32
    %c0_i32_0 = arith.constant 0 : i32
    %c0_i32_1 = arith.constant 0 : i32
    return %c0_i32, %c0_i32_0 : i32, i32
  }
  func.func @transform_2(%arg0: i32, %arg1: memref<1xi32, #tpu.memory_space<smem>>) -> (i32, i32) {
    %c0_i32 = arith.constant 0 : i32
    %c0_i32_0 = arith.constant 0 : i32
    %c0_i32_1 = arith.constant 0 : i32
    return %c0_i32, %c0_i32_0 : i32, i32
  }
  func.func @transform_3(%arg0: i32, %arg1: memref<1xi32, #tpu.memory_space<smem>>) -> (i32, i32) {
    %c0_i32 = arith.constant 0 : i32
    %c0_i32_0 = arith.constant 0 : i32
    %c0_i32_1 = arith.constant 0 : i32
    return %c0_i32, %c0_i32_0 : i32, i32
  }
  func.func @transform_4(%arg0: i32, %arg1: memref<1xi32, #tpu.memory_space<smem>>) -> (i32, i32) {
    %c0_i32 = arith.constant 0 : i32
    %c0_i32_0 = arith.constant 0 : i32
    %c0_i32_1 = arith.constant 0 : i32
    return %c0_i32, %c0_i32_0 : i32, i32
  }
  func.func @transform_5(%arg0: i32, %arg1: memref<1xi32, #tpu.memory_space<smem>>) -> (i32, i32) {
    %c0_i32 = arith.constant 0 : i32
    %c0_i32_0 = arith.constant 0 : i32
    return %arg0, %c0_i32 : i32, i32
  }
}

</mosaic_0001>

<bundles_post_ra>
// kernel: tpu_custom_call.1
= control target key start
LH: loop header
LB: loop body
LE: loop exit
PB: predicated region body
PF: predicated region fallthrough
CT: control target
= control target key end

     0   :  { %12 = vsyncpa [#allocation5], 0  ;;  %s1146_s0 = inlined_call_operand.<no memory space> [shape: s32[1], index: 0, kind: input, shape index: {}]   ;;  %s1147_s1 = inlined_call_operand.hbm [shape: bf16[16,128], index: 1, kind: input, shape index: {}]   ;;  %s1148_s2 = inlined_call_operand.hbm [shape: bf16[128,512], index: 2, kind: input, shape index: {}]   ;;  %s1149_s3 = inlined_call_operand.vmem [shape: f32[1,512], index: 3, kind: input, shape index: {}]   ;;  %s1150_s4 = inlined_call_operand.hbm [shape: bf16[512,128], index: 4, kind: input, shape index: {}]   ;;  %s1151_s5 = inlined_call_operand.vmem [shape: f32[1,128], index: 5, kind: input, shape index: {}]   ;;  %s1152_s6 = inlined_call_operand.hbm [shape: f32[16,128], index: 6, kind: output, shape index: {}]  }
   0x1   :  { %13 = vsyncpa [#allocation8], 0 }
   0x2   :  { %14 = vsyncpa [#allocation6], 0  ;;  %s1046_s0 = smov [#allocation7]   ;;  %s952_s24 = scalar_lea.hbm %s1148_s2, 4096 }
   0x3   :  { %s32_s21 = sshll.u32 %s1046_s0, 4  ;;  %p953_p0 = scmp.ne.s32.totalorder %s1148_s2, %s952_s24  ;;  %s33_s21 = int_to_ptr.vmem [resolvable:$true] %s32_s21 }
   0x4   :  { %p956_p1 = scmp.lt.u32.totalorder %s952_s24, %s1148_s2 }
   0x6   :  { %p958_p2 = pnand %p956_p1, %p953_p0 }
   0x8   :  { %961 = shalt.err (!%p958_p2)
}
   0x9   :  { %s962_s29 = scalar_lea.vmem %s33_s21, 4096  ;;  %p967_p4 = scmp.lt.s32.totalorder %s33_s21, %s33_s21 }
   0xa   :  { %p963_p3 = scmp.ne.s32.totalorder %s33_s21, %s962_s29  ;;  %p968_p5 = scmp.lt.s32.totalorder %s962_s29, %s962_s29 }
   0xc   :  { %p969_p6 = por %p968_p5, %p967_p4 }
   0xe   :  { %p970_p7 = pnand %p969_p6, %p963_p3 }
  0x10   :  { %973 = shalt.err (!%p970_p7)
}
  0x11   :  { %s1047_s30 = smov 256   ;;  %s1048_s7 = smov 16  }
  0x12   :  { %38 = dma.hbm_to_vmem [thread:$0]  %s1148_s2, 4096, %s33_s21, [#allocation8], %s1047_s30, %s1047_s30, %s1048_s7  }
  0x13   :  { %s1049_s10 = smov [#allocation4]   ;;  %s974_s14 = scalar_lea.hbm %s1147_s1, 128 }
  0x14   :  { %s20_s11 = sshll.u32 %s1049_s10, 4  ;;  %p975_p8 = scmp.ne.s32.totalorder %s1147_s1, %s974_s14  ;;  %s21_s11 = int_to_ptr.vmem [resolvable:$true] %s20_s11 }
  0x15   :  { %p978_p9 = scmp.lt.u32.totalorder %s974_s14, %s1147_s1 }
  0x17   :  { %p980_p10 = pnand %p978_p9, %p975_p8 }
  0x19   :  { %983 = shalt.err (!%p980_p10)
}
  0x1a   :  { %s984_s19 = scalar_lea.vmem %s21_s11, 128  ;;  %p989_p12 = scmp.lt.s32.totalorder %s21_s11, %s21_s11 }
  0x1b   :  { %p985_p11 = scmp.ne.s32.totalorder %s21_s11, %s984_s19  ;;  %p990_p13 = scmp.lt.s32.totalorder %s984_s19, %s984_s19 }
  0x1d   :  { %p991_p0 = por %p990_p13, %p989_p12 }
  0x1f   :  { %p992_p1 = pnand %p991_p0, %p985_p11 }
  0x21   :  { %995 = shalt.err (!%p992_p1)
}
  0x22   :  { %s1050_s2 = smov 64   ;;  %s1051_s20 = smov 4  }
  0x23   :  { %26 = dma.hbm_to_vmem [thread:$0]  %s1147_s1, 128, %s21_s11, [#allocation5], %s1050_s2, %s1050_s2, %s1051_s20  }
  0x24   :  { %s1052_s22 = smov [#allocation9]   ;;  %s996_s26 = scalar_lea.hbm %s1150_s4, 4096 }
  0x25   :  { %s46_s23 = sshll.u32 %s1052_s22, 4  ;;  %p997_p2 = scmp.ne.s32.totalorder %s1150_s4, %s996_s26  ;;  %s47_s23 = int_to_ptr.vmem [resolvable:$true] %s46_s23 }
  0x26   :  { %p1000_p3 = scmp.lt.u32.totalorder %s996_s26, %s1150_s4 }
  0x28   :  { %p1002_p4 = pnand %p1000_p3, %p997_p2 }
  0x2a   :  { %1005 = shalt.err (!%p1002_p4)
}
  0x2b   :  { %s1006_s7 = scalar_lea.vmem %s47_s23, 4096  ;;  %p1011_p6 = scmp.lt.s32.totalorder %s47_s23, %s47_s23 }
  0x2c   :  { %p1007_p5 = scmp.ne.s32.totalorder %s47_s23, %s1006_s7  ;;  %p1012_p7 = scmp.lt.s32.totalorder %s1006_s7, %s1006_s7 }
  0x2e   :  { %p1013_p8 = por %p1012_p7, %p1011_p6 }
  0x30   :  { %p1014_p9 = pnand %p1013_p8, %p1007_p5 }
  0x32   :  { %1017 = shalt.err (!%p1014_p9)
}
  0x33   :  { %52 = dma.hbm_to_vmem [thread:$0]  %s1150_s4, 4096, %s47_s23, [#allocation8], %s1050_s2, %s1050_s2, %s1051_s20  }
  0x34   :  { %1040 = dma.done.wait [#allocation5], 128  }
  0x35   :  { %1041 = vsyncadd [#allocation5], 4294967168 }
  0x36   :  { %1042 = dma.done.wait [#allocation8], 8192  }
  0x37   :  { %1043 = vsyncadd [#allocation8], 4294959104  ;;  %v1053_v0 = vmov 0   ;;  %v871_v1 = vld [vmem:[#allocation7 + $0x4] ss:$16 sps:$4 sm:$0xff]   ;;  %v919_v34 = vld [vmem:[#allocation4] sm:$0xff]  }
  0x38   :  { %319 = vmatprep.mubr.bf16.mxu0 %v1053_v0  ;;  %362 = vmatprep.mubr.bf16.mxu1 %v1053_v0  ;;  %v873_v2 = vld [vmem:[#allocation7 + $0xc] ss:$16 sps:$4 sm:$0xff]   ;;  %v875_v3 = vld [vmem:[#allocation7] ss:$16 sps:$4 sm:$0xff]   ;;  %v876_v4 = vld [vmem:[#allocation7 + $0x8] ss:$16 sps:$4 sm:$0xff]  }
  0x39   :  { %287 = vmatprep.subr.bf16.mxu0 %v871_v1  ;;  %330 = vmatprep.subr.bf16.mxu1 %v873_v2  ;;  %v877_v5 = vld [vmem:[#allocation7 + $0x24] ss:$16 sps:$4 sm:$0xff]   ;;  %v879_v6 = vld [vmem:[#allocation7 + $0x2c] ss:$16 sps:$4 sm:$0xff]   ;;  %v881_v7 = vld [vmem:[#allocation7 + $0x20] ss:$16 sps:$4 sm:$0xff]   ;;  %v101_v2 = vlaneseq }
  0x3a   :  { %288 = vmatpush1.bf16.msra.mxu0 %v875_v3  ;;  %331 = vmatpush1.bf16.msra.mxu1 %v876_v4  ;;  %v882_v8 = vld [vmem:[#allocation7 + $0x28] ss:$16 sps:$4 sm:$0xff]   ;;  %v883_v9 = vld [vmem:[#allocation7 + $0x44] ss:$16 sps:$4 sm:$0xff]   ;;  %v885_v10 = vld [vmem:[#allocation7 + $0x4c] ss:$16 sps:$4 sm:$0xff]  }
  0x3b   :  { %289 = vmatprep.subr.bf16.mxu0 %v877_v5  ;;  %332 = vmatprep.subr.bf16.mxu1 %v879_v6  ;;  %v887_v11 = vld [vmem:[#allocation7 + $0x40] ss:$16 sps:$4 sm:$0xff]   ;;  %v888_v12 = vld [vmem:[#allocation7 + $0x48] ss:$16 sps:$4 sm:$0xff]   ;;  %v889_v13 = vld [vmem:[#allocation7 + $0x64] ss:$16 sps:$4 sm:$0xff]  }
  0x3c   :  { %v891_v14 = vld [vmem:[#allocation7 + $0x6c] ss:$16 sps:$4 sm:$0xff]   ;;  %v893_v15 = vld [vmem:[#allocation7 + $0x60] ss:$16 sps:$4 sm:$0xff]   ;;  %v894_v16 = vld [vmem:[#allocation7 + $0x68] ss:$16 sps:$4 sm:$0xff]  }
  0x3d   :  { %v895_v17 = vld [vmem:[#allocation7 + $0x84] ss:$16 sps:$4 sm:$0xff]   ;;  %v897_v18 = vld [vmem:[#allocation7 + $0x8c] ss:$16 sps:$4 sm:$0xff]   ;;  %v899_v19 = vld [vmem:[#allocation7 + $0x80] ss:$16 sps:$4 sm:$0xff]  }
  0x3e   :  { %290 = vmatpush1.bf16.msra.mxu0 %v881_v7  ;;  %333 = vmatpush1.bf16.msra.mxu1 %v882_v8  ;;  %v900_v20 = vld [vmem:[#allocation7 + $0x88] ss:$16 sps:$4 sm:$0xff]   ;;  %v901_v21 = vld [vmem:[#allocation7 + $0xa4] ss:$16 sps:$4 sm:$0xff]   ;;  %v903_v22 = vld [vmem:[#allocation7 + $0xac] ss:$16 sps:$4 sm:$0xff]  }
  0x3f   :  { %291 = vmatprep.subr.bf16.mxu0 %v883_v9  ;;  %334 = vmatprep.subr.bf16.mxu1 %v885_v10  ;;  %v905_v23 = vld [vmem:[#allocation7 + $0xa0] ss:$16 sps:$4 sm:$0xff]   ;;  %v906_v24 = vld [vmem:[#allocation7 + $0xa8] ss:$16 sps:$4 sm:$0xff]   ;;  %v907_v25 = vld [vmem:[#allocation7 + $0xc4] ss:$16 sps:$4 sm:$0xff]  }
  0x40   :  { %v909_v26 = vld [vmem:[#allocation7 + $0xcc] ss:$16 sps:$4 sm:$0xff]   ;;  %v911_v27 = vld [vmem:[#allocation7 + $0xc0] ss:$16 sps:$4 sm:$0xff]   ;;  %v912_v28 = vld [vmem:[#allocation7 + $0xc8] ss:$16 sps:$4 sm:$0xff]  }
  0x41   :  { %v913_v29 = vld [vmem:[#allocation7 + $0xe4] ss:$16 sps:$4 sm:$0xff]   ;;  %v915_v30 = vld [vmem:[#allocation7 + $0xec] ss:$16 sps:$4 sm:$0xff]   ;;  %v917_v31 = vld [vmem:[#allocation7 + $0xe0] ss:$16 sps:$4 sm:$0xff]  }
  0x42   :  { %292 = vmatpush1.bf16.msra.mxu0 %v887_v11  ;;  %335 = vmatpush1.bf16.msra.mxu1 %v888_v12  ;;  %v918_v32 = vld [vmem:[#allocation7 + $0xe8] ss:$16 sps:$4 sm:$0xff]   ;;  %v920_v33 = vld [vmem:[#allocation9 + $0x40] sm:$0xff]   ;;  %v928_v42 = vld [vmem:[#allocation9 + $0x50] sm:$0xff]   ;;  %v102_v3 = vshrl.u32 %v101_v2, 7  ;;  %s1054_s11 = smov [#allocation10]  }
  0x43   :  { %293 = vmatprep.subr.bf16.mxu0 %v889_v13  ;;  %336 = vmatprep.subr.bf16.mxu1 %v891_v14  ;;  %v921_v35 = vld [vmem:[#allocation9 + $0xc0] sm:$0xff]   ;;  %v924_v38 = vld [vmem:[#allocation9 + $0x48] sm:$0xff]   ;;  %v929_v43 = vld [vmem:[#allocation9 + $0xd0] sm:$0xff]   ;;  %s737_s12 = sshll.u32 %s1054_s11, 4  ;;  %s738_s12 = int_to_ptr.vmem [resolvable:$true] %s737_s12 }
  0x44   :  { %v922_v36 = vld [vmem:[#allocation9] sm:$0xff]   ;;  %v925_v39 = vld [vmem:[#allocation9 + $0xc8] sm:$0xff]   ;;  %v930_v44 = vld [vmem:[#allocation9 + $0x10] sm:$0xff]   ;;  %v103_v4 = vsub.s32 0, %v102_v3  ;;  %v111_v5 = vsub.s32 2, %v102_v3  ;;  %v107_v7 = vsub.s32 1, %v102_v3  ;;  %p1023_p11 = scmp.lt.s32.totalorder %s738_s12, %s738_s12 }
  0x45   :  { %v923_v37 = vld [vmem:[#allocation9 + $0x80] sm:$0xff]   ;;  %v926_v40 = vld [vmem:[#allocation9 + $0x8] sm:$0xff]   ;;  %v931_v45 = vld [vmem:[#allocation9 + $0x90] sm:$0xff]   ;;  %v115_v8 = vsub.s32 3, %v102_v3 }
  0x46   :  { %294 = vmatpush1.bf16.msra.mxu0 %v893_v15  ;;  %337 = vmatpush1.bf16.msra.mxu1 %v894_v16  ;;  %v927_v41 = vld [vmem:[#allocation9 + $0x88] sm:$0xff]   ;;  %v932_v46 = vld [vmem:[#allocation9 + $0x58] sm:$0xff]   ;;  %v936_v50 = vld [vmem:[#allocation9 + $0x60] sm:$0xff]  }
  0x47   :  { %295 = vmatprep.subr.bf16.mxu0 %v895_v17  ;;  %338 = vmatprep.subr.bf16.mxu1 %v897_v18  ;;  %v933_v47 = vld [vmem:[#allocation9 + $0xd8] sm:$0xff]   ;;  %v937_v51 = vld [vmem:[#allocation9 + $0xe0] sm:$0xff]   ;;  %v940_v54 = vld [vmem:[#allocation9 + $0x68] sm:$0xff]  }
  0x48   :  { %v934_v48 = vld [vmem:[#allocation9 + $0x18] sm:$0xff]   ;;  %v938_v52 = vld [vmem:[#allocation9 + $0x20] sm:$0xff]   ;;  %v941_v55 = vld [vmem:[#allocation9 + $0xe8] sm:$0xff]  }
  0x49   :  { %v935_v49 = vld [vmem:[#allocation9 + $0x98] sm:$0xff]   ;;  %v939_v53 = vld [vmem:[#allocation9 + $0xa0] sm:$0xff]   ;;  %v942_v56 = vld [vmem:[#allocation9 + $0x28] sm:$0xff]  }
  0x4a   :  { %296 = vmatpush1.bf16.msra.mxu0 %v899_v19  ;;  %339 = vmatpush1.bf16.msra.mxu1 %v900_v20  ;;  %v943_v57 = vld [vmem:[#allocation9 + $0xa8] sm:$0xff]   ;;  %v944_v58 = vld [vmem:[#allocation9 + $0x70] sm:$0xff]   ;;  %v948_v62 = vld [vmem:[#allocation9 + $0x78] sm:$0xff]  }
  0x4b   :  { %297 = vmatprep.subr.bf16.mxu0 %v901_v21  ;;  %340 = vmatprep.subr.bf16.mxu1 %v903_v22  ;;  %v945_v59 = vld [vmem:[#allocation9 + $0xf0] sm:$0xff]   ;;  %v949_v63 = vld [vmem:[#allocation9 + $0xf8] sm:$0xff]  }
  0x4c   :  { %v946_v60 = vld [vmem:[#allocation9 + $0x30] sm:$0xff]   ;;  %v950_v0 = vld [vmem:[#allocation9 + $0x38] sm:$0xff]  }
  0x4d   :  { %v947_v61 = vld [vmem:[#allocation9 + $0xb0] sm:$0xff]   ;;  %v951_v1 = vld [vmem:[#allocation9 + $0xb8] sm:$0xff]  }
  0x4e   :  { %298 = vmatpush1.bf16.msra.mxu0 %v905_v23  ;;  %341 = vmatpush1.bf16.msra.mxu1 %v906_v24  ;;  %v99_v6 = vld [vmem:[%s1149_s3] sm:$0xf] }
  0x4f   :  { %299 = vmatprep.subr.bf16.mxu0 %v907_v25  ;;  %342 = vmatprep.subr.bf16.mxu1 %v909_v26  ;;  %v104_v9 = vrot.slane %v99_v6, %v103_v4  ;;  %v112_v10 = vrot.slane %v99_v6, %v111_v5  ;;  %v108_v11 = vrot.slane %v99_v6, %v107_v7 }
  0x50   :  { %v116_v12 = vrot.slane %v99_v6, %v115_v8 }
  0x52   :  { %300 = vmatpush1.bf16.msra.mxu0 %v911_v27  ;;  %343 = vmatpush1.bf16.msra.mxu1 %v912_v28 }
  0x53   :  { %301 = vmatprep.subr.bf16.mxu0 %v913_v29  ;;  %344 = vmatprep.subr.bf16.mxu1 %v915_v30 }
  0x56   :  { %302 = vmatpush1.bf16.msra.mxu0 %v917_v31  ;;  %345 = vmatpush1.bf16.msra.mxu1 %v918_v32 }
  0x57   :  { %816 = vmatprep.subr.bf16.mxu0 %v920_v33  ;;  %838 = vmatprep.subr.bf16.mxu1 %v921_v35 }
  0x59   :  { %320 = vmatmul.mubr.bf16.vlgmr.msra.gmra.mrb[0].mxu0 %v919_v34  ;;  %363 = vmatmul.mubr.bf16.vlgmr.msra.gmra.mrb[0].mxu1 %v919_v34 }
  0x5a   :  { %817 = vmatpush3.bf16.msra.mxu0 %v922_v36  ;;  %839 = vmatpush3.bf16.msra.mxu1 %v923_v37 }
  0x5b   :  { %818 = vmatprep.subr.bf16.mxu0 %v924_v38  ;;  %840 = vmatprep.subr.bf16.mxu1 %v925_v39 }
  0x5e   :  { %819 = vmatpush3.bf16.msra.mxu0 %v926_v40  ;;  %841 = vmatpush3.bf16.msra.mxu1 %v927_v41 }
  0x5f   :  { %820 = vmatprep.subr.bf16.mxu0 %v928_v42  ;;  %842 = vmatprep.subr.bf16.mxu1 %v929_v43  ;;  %v783_v43 = vld [vmem:[%s1151_s5] ss:$0 sm:$0xff]  ;;  %s1018_s5 = scalar_lea.vmem %s738_s12, 256 }
  0x60   :  { %p1019_p10 = scmp.ne.s32.totalorder %s738_s12, %s1018_s5  ;;  %p1024_p12 = scmp.lt.s32.totalorder %s1018_s5, %s1018_s5 }
  0x62   :  { %821 = vmatpush3.bf16.msra.mxu0 %v930_v44  ;;  %843 = vmatpush3.bf16.msra.mxu1 %v931_v45  ;;  %p1025_p13 = por %p1024_p12, %p1023_p11 }
  0x63   :  { %822 = vmatprep.subr.bf16.mxu0 %v932_v46  ;;  %844 = vmatprep.subr.bf16.mxu1 %v933_v47 }
  0x64   :  { %p1026_p0 = pnand %p1025_p13, %p1019_p10 }
  0x66   :  { %823 = vmatpush3.bf16.msra.mxu0 %v934_v48  ;;  %845 = vmatpush3.bf16.msra.mxu1 %v935_v49 }
  0x67   :  { %824 = vmatprep.subr.bf16.mxu0 %v936_v50  ;;  %846 = vmatprep.subr.bf16.mxu1 %v937_v51 }
  0x6a   :  { %825 = vmatpush3.bf16.msra.mxu0 %v938_v52  ;;  %847 = vmatpush3.bf16.msra.mxu1 %v939_v53 }
  0x6b   :  { %826 = vmatprep.subr.bf16.mxu0 %v940_v54  ;;  %848 = vmatprep.subr.bf16.mxu1 %v941_v55 }
  0x6e   :  { %827 = vmatpush3.bf16.msra.mxu0 %v942_v56  ;;  %849 = vmatpush3.bf16.msra.mxu1 %v943_v57 }
  0x6f   :  { %828 = vmatprep.subr.bf16.mxu0 %v944_v58  ;;  %850 = vmatprep.subr.bf16.mxu1 %v945_v59 }
  0x72   :  { %829 = vmatpush3.bf16.msra.mxu0 %v946_v60  ;;  %851 = vmatpush3.bf16.msra.mxu1 %v947_v61 }
  0x73   :  { %830 = vmatprep.subr.bf16.mxu0 %v948_v62  ;;  %852 = vmatprep.subr.bf16.mxu1 %v949_v63 }
  0x76   :  { %831 = vmatpush3.bf16.msra.mxu0 %v950_v0  ;;  %853 = vmatpush3.bf16.msra.mxu1 %v951_v1 }
 0x12c   :  { %v321_v13 = vpop.f32.mrb[0].mxu0  ;;  %v364_v14 = vpop.f32.mrb[0].mxu1 }
 0x12d   :  { %v322_v15 = vadd.f32 %v321_v13, %v104_v9  ;;  %v365_v16 = vadd.f32 %v364_v14, %v112_v10  ;;  %v323_v17 = vpop.f32.mrb[1].mxu0  ;;  %v366_v18 = vpop.f32.mrb[1].mxu1 }
 0x12e   :  { %v324_v19 = vadd.f32 %v323_v17, %v108_v11  ;;  %v367_v20 = vadd.f32 %v366_v18, %v116_v12  ;;  %v325_v21 = vpop.f32.mrb[2].mxu0  ;;  %v368_v22 = vpop.f32.mrb[2].mxu1 }
 0x12f   :  { %v375_v23 = vmax.f32 %v365_v16, 0.0  ;;  %v326_v24 = vadd.f32 %v325_v21, %v104_v9  ;;  %v369_v25 = vadd.f32 %v368_v22, %v112_v10  ;;  %v327_v26 = vpop.f32.mrb[3].mxu0  ;;  %v370_v27 = vpop.f32.mrb[3].mxu1  ;;  %v373_v31 = vmax.f32 %v322_v15, 0.0 }
 0x130   :  { %v376_v28 = vmax.f32 %v367_v20, 0.0  ;;  %v328_v29 = vadd.f32 %v327_v26, %v108_v11  ;;  %v371_v30 = vadd.f32 %v370_v27, %v116_v12  ;;  %v374_v34 = vmax.f32 %v324_v19, 0.0 }
 0x131   :  { %v377_v32 = vmax.f32 %v326_v24, 0.0  ;;  %v379_v33 = vmax.f32 %v369_v25, 0.0 }
 0x132   :  { %v378_v35 = vmax.f32 %v328_v29, 0.0  ;;  %v380_v36 = vmax.f32 %v371_v30, 0.0 }
 0x133   :  { %v381_v37 = vpack.c.bf16 %v377_v32, %v373_v31  ;;  %v383_v38 = vpack.c.bf16 %v379_v33, %v375_v23 }
 0x134   :  { %v382_v39 = vpack.c.bf16 %v378_v35, %v374_v34  ;;  %v384_v40 = vpack.c.bf16 %v380_v36, %v376_v28 }
 0x136   :  { %680 = vmatprep.mubr.bf16.mxu0 %v382_v39  ;;  %721 = vmatprep.mubr.bf16.mxu1 %v384_v40 }
 0x137   :  { %681 = vmatmul.mubr.bf16.vlgmr.msra.gmra.mrb[4].mxu0 %v381_v37  ;;  %722 = vmatmul.mubr.bf16.vlgmr.msra.gmra.mrb[4].mxu1 %v383_v38 }
 0x20a   :  { %v832_v41 = vpop.f32.mrb[4].mxu0  ;;  %v854_v42 = vpop.f32.mrb[4].mxu1 }
 0x20b   :  { %v833_v44 = vpop.f32.mrb[5].mxu0  ;;  %v855_v45 = vpop.f32.mrb[5].mxu1 }
 0x20c   :  { %v834_v46 = vadd.f32 %v833_v44, %v832_v41  ;;  %v856_v47 = vadd.f32 %v855_v45, %v854_v42  ;;  %v835_v48 = vpop.f32.mrb[6].mxu0  ;;  %v857_v49 = vpop.f32.mrb[6].mxu1 }
 0x20d   :  { %v836_v50 = vpop.f32.mrb[7].mxu0  ;;  %v858_v51 = vpop.f32.mrb[7].mxu1 }
 0x20e   :  { %v683_v52 = vadd.f32 %v834_v46, %v783_v43  ;;  %v837_v53 = vadd.f32 %v836_v50, %v835_v48  ;;  %v859_v54 = vadd.f32 %v858_v51, %v857_v49 }
 0x210   :  { %v724_v55 = vadd.f32 %v856_v47, %v683_v52  ;;  %v686_v56 = vadd.f32 %v837_v53, %v783_v43 }
 0x212   :  { %730 = vst [vmem:[#allocation10] sm:$0xff] %v724_v55  ;;  %v727_v57 = vadd.f32 %v859_v54, %v686_v56 }
 0x214   :  { %731 = vst [vmem:[#allocation10 + $0x8] sm:$0xff] %v727_v57 }
 0x215   :  { %1029 = shalt.err (!%p1026_p0)
}
 0x216   :  { %s1030_s15 = scalar_lea.hbm %s1152_s6, 256 }
 0x217   :  { %p1031_p1 = scmp.ne.s32.totalorder %s1152_s6, %s1030_s15  ;;  %p1034_p2 = scmp.lt.u32.totalorder %s1030_s15, %s1152_s6 }
 0x219   :  { %p1036_p3 = pnand %p1034_p2, %p1031_p1 }
 0x21b   :  { %1039 = shalt.err (!%p1036_p3)
}
 0x21c   :  { %s1055_s2 = smov 128   ;;  %s1056_s20 = smov 8  }
 0x21d   :  { %743 = dma.vmem_to_hbm [thread:$0]  %s738_s12, 256, %s1152_s6, [#allocation6], %s1055_s2, %s1055_s2, %s1056_s20  }
 0x21e   :  { %1044 = dma.done.wait [#allocation6], 256  }
 0x21f   :  { %1045 = vsyncadd [#allocation6], 4294967040 }
 0x220   :  { %747 = vsyncpa [#allocation5], 1 }
 0x221   :  { %748 = vsyncpa [#allocation8], 1 }
 0x222   :  { %749 = vsyncpa [#allocation6], 1 }

</bundles_post_ra>
